<compile_context>
chip_gen: v7x
topology: tpu7x:2x2x1
jax: 0.10.0
libtpu: 0.0.40
codegen_flags: <defaults>
</compile_context>

<pallas_src>
import functools

import jax
import jax.numpy as jnp
from jax.experimental import pallas as pl
from jax.experimental.pallas import tpu as pltpu


# --------------------------- Chip-aware tiling --------------------------------

def _tpu_generation():
    try:
        kind = jax.devices()[0].device_kind.lower()
    except Exception:
        return 0
    for gen in (7, 6, 5, 4):
        if f"v{gen}" in kind:
            return gen
    return 0


_GEN = _tpu_generation()


def _batch_tile(bsz):
    """Batch tile choice.

    v7x (2 TCs/chip): aim for >= 2 grid steps so the batch axis can split
    across TensorCores; per-core tiles of up to 1024 rows are only a few
    hundred KiB of VMEM.  v5e/v6e (1 TC): a single full-batch tile for small B
    avoids per-step pipeline overhead; cap at 1024 rows for large B.
    """
    if _GEN >= 7:
        for tb in (1024, 512, 256, 128, 64, 32, 16, 8):
            if bsz % tb == 0 and bsz // tb >= 2:
                return tb
        return bsz
    if bsz <= 512:
        return bsz
    for tb in (1024, 512, 256, 128):
        if bsz % tb == 0:
            return tb
    return bsz


def _dim_semantics(num_steps):
    if _GEN >= 7 and num_steps >= 2:
        return (pltpu.CORE_PARALLEL,)          # explicit megacore split on v7x
    return ("parallel",)


# ----------------------------- Pallas kernels ---------------------------------

def _mlp_concat_kernel(lat_ref, act_ref, w1l_ref, w1a_ref, b1_ref, w2_ref,
                       b2_ref, o_ref):
    """y = ReLU(cat([lat, act], -1) @ W1 + b1) @ W2 + b2, concat fused as two matmuls."""
    h = jnp.dot(lat_ref[...].astype(w1l_ref.dtype), w1l_ref[...],
                preferred_element_type=jnp.float32)
    h = h + jnp.dot(act_ref[...].astype(w1a_ref.dtype), w1a_ref[...],
                    preferred_element_type=jnp.float32)
    h = jnp.maximum(h + b1_ref[...], 0.0)            # f32 epilogue (v5e-safe)
    y = jnp.dot(h.astype(w2_ref.dtype), w2_ref[...],
                preferred_element_type=jnp.float32)
    o_ref[...] = (y + b2_ref[...]).astype(o_ref.dtype)


def _mlp_kernel(x_ref, w1_ref, b1_ref, w2_ref, b2_ref, o_ref):
    """action is None branch: wrapped(latent) directly."""
    h = jnp.dot(x_ref[...].astype(w1_ref.dtype), w1_ref[...],
                preferred_element_type=jnp.float32)
    h = jnp.maximum(h + b1_ref[...], 0.0)
    y = jnp.dot(h.astype(w2_ref.dtype), w2_ref[...],
                preferred_element_type=jnp.float32)
    o_ref[...] = (y + b2_ref[...]).astype(o_ref.dtype)


# ------------------------------- Wrappers --------------------------------------

@jax.jit
def _forward_with_action(latent, action, w1_lat, w1_act, b1, w2, b2):
    bsz, dl = latent.shape
    da = action.shape[1]
    h = w1_lat.shape[1]
    o = w2.shape[1]
    tb = _batch_tile(bsz)
    steps = bsz // tb
    return pl.pallas_call(
        _mlp_concat_kernel,
        grid=(steps,),
        in_specs=[
            pl.BlockSpec((tb, dl), lambda i: (i, 0)),
            pl.BlockSpec((tb, da), lambda i: (i, 0)),
            pl.BlockSpec((dl, h), lambda i: (0, 0)),   # VMEM-resident weights
            pl.BlockSpec((da, h), lambda i: (0, 0)),   # (constant index_map:
            pl.BlockSpec((1, h), lambda i: (0, 0)),    #  not re-fetched per step)
            pl.BlockSpec((h, o), lambda i: (0, 0)),
            pl.BlockSpec((1, o), lambda i: (0, 0)),
        ],
        out_specs=pl.BlockSpec((tb, o), lambda i: (i, 0)),
        out_shape=jax.ShapeDtypeStruct((bsz, o), jnp.float32),
        compiler_params=pltpu.CompilerParams(
            dimension_semantics=_dim_semantics(steps)),
    )(latent, action, w1_lat, w1_act, b1, w2, b2)


@jax.jit
def _forward_no_action(latent, w1, b1, w2, b2):
    bsz, dl = latent.shape
    h = w1.shape[1]
    o = w2.shape[1]
    tb = _batch_tile(bsz)
    steps = bsz // tb
    return pl.pallas_call(
        _mlp_kernel,
        grid=(steps,),
        in_specs=[
            pl.BlockSpec((tb, dl), lambda i: (i, 0)),
            pl.BlockSpec((dl, h), lambda i: (0, 0)),
            pl.BlockSpec((1, h), lambda i: (0, 0)),
            pl.BlockSpec((h, o), lambda i: (0, 0)),
            pl.BlockSpec((1, o), lambda i: (0, 0)),
        ],
        out_specs=pl.BlockSpec((tb, o), lambda i: (i, 0)),
        out_shape=jax.ShapeDtypeStruct((bsz, o), jnp.float32),
        compiler_params=pltpu.CompilerParams(
            dimension_semantics=_dim_semantics(steps)),
    )(latent, w1, b1, w2, b2)


def action_aware_predictor(latent, params, action=None):
    """Pallas implementation of ActionAwarePredictor.forward."""
    if action is not None:
        assert params["w1_act"] is not None, "wrapped module expects latent+action input"
        return _forward_with_action(latent, action, params["w1_lat"],
                                    params["w1_act"], params["b1"],
                                    params["w2"], params["b2"])
    return _forward_no_action(latent, params["w1_lat"], params["b1"],
                              params["w2"], params["b2"])


# ----------------------------- Param packing -----------------------------------

def prepare_params(w1, b1, w2, b2, *, d_lat, d_act=None,
                   weight_dtype=jnp.bfloat16):
    """Split/cast the wrapped MLP's parameters for the Pallas kernels.

    w1: [D_in, H], b1: [H], w2: [H, O], b2: [O], D_in = d_lat (+ d_act).
    For the with-action predictor, W1 is split into its latent rows and action
    rows so the concat is computed as a sum of two matmuls inside the kernel.
    Weights are stored bf16; biases stay f32 for the VPU epilogue.
    """
    params = {
        "b1": b1.astype(jnp.float32).reshape(1, -1),
        "w2": w2.astype(weight_dtype),
        "b2": b2.astype(jnp.float32).reshape(1, -1),
    }
    if d_act is None:                                   # wrapped(latent) directly
        assert w1.shape[0] == d_lat
        params["w1_lat"] = w1.astype(weight_dtype)
        params["w1_act"] = None
    else:                                               # cat([latent, action], -1)
        assert w1.shape[0] == d_lat + d_act
        params["w1_lat"] = w1[:d_lat].astype(weight_dtype)
        params["w1_act"] = w1[d_lat:].astype(weight_dtype)
    return params


# ------------------------------ Reference ---------------------------------------

def _reference_mlp(x, w1, b1, w2, b2):
    # Same numerics as the kernel: bf16 matmul operands, f32 accumulation,
    # f32 bias/ReLU epilogue.
    bf = jnp.bfloat16
    h = jnp.dot(x.astype(bf), w1.astype(bf),
                preferred_element_type=jnp.float32) + b1
    h = jnp.maximum(h, 0.0)
    return jnp.dot(h.astype(bf), w2.astype(bf),
                   preferred_element_type=jnp.float32) + b2


# -------------------------------- Main -------------------------------------------

if __name__ == "__main__":
    # Batch sized so batch tiling (and the v7x core split) is actually exercised;
    # feature dims stay small as the module implies.
    B, D_LAT, D_ACT, H, O = 256, 32, 16, 64, 32

    key = jax.random.PRNGKey(0)
    keys = jax.random.split(key, 8)

    latent = jax.random.normal(keys[0], (B, D_LAT), jnp.float32)
    action = jax.random.normal(keys[1], (B, D_ACT), jnp.float32)

    # ---- With-action predictor: wrapped MLP sized for D_LAT + D_ACT inputs -----
    w1_a = jax.random.normal(keys[2], (D_LAT + D_ACT, H), jnp.float32) * 0.1
    b1_a = jax.random.normal(keys[3], (H,), jnp.float32) * 0.1
    w2_a = jax.random.normal(keys[4], (H, O), jnp.float32) * 0.1
    b2_a = jax.random.normal(keys[5], (O,), jnp.float32) * 0.1
    params_a = prepare_params(w1_a, b1_a, w2_a, b2_a, d_lat=D_LAT, d_act=D_ACT)

    out = action_aware_predictor(latent, params_a, action)
    out = jax.block_until_ready(out)
    ref = _reference_mlp(jnp.concatenate([latent, action], axis=-1),
                         w1_a, b1_a, w2_a, b2_a)
    assert out.shape == (B, O)
    # Tolerance reflects bf16 operand storage (f32 accumulation everywhere).
    assert jnp.allclose(out, ref, atol=5e-3, rtol=5e-3), \
        f"max abs err {float(jnp.max(jnp.abs(out - ref)))}"

    # ---- No-action predictor: wrapped MLP sized for D_LAT inputs ----------------
    w1_n = jax.random.normal(keys[6], (D_LAT, H), jnp.float32) * 0.1
    params_n = prepare_params(w1_n, b1_a, w2_a, b2_a, d_lat=D_LAT, d_act=None)

    out2 = action_aware_predictor(latent, params_n, None)
    out2 = jax.block_until_ready(out2)
    ref2 = _reference_mlp(latent, w1_n, b1_a, w2_a, b2_a)
    assert out2.shape == (B, O)
    assert jnp.allclose(out2, ref2, atol=5e-3, rtol=5e-3), \
        f"max abs err {float(jnp.max(jnp.abs(out2 - ref2)))}"

    print("KERNEL_OK")
</pallas_src>

<mosaic_0001>
module attributes {stable_mosaic.version = 11 : i64} {
  func.func @_mlp_concat_kernel(%arg0: i32, %arg1: memref<256x32xf32, #tpu.memory_space<vmem>>, %arg2: memref<256x16xf32, #tpu.memory_space<vmem>>, %arg3: memref<32x64xbf16, #tpu.memory_space<vmem>>, %arg4: memref<16x64xbf16, #tpu.memory_space<vmem>>, %arg5: memref<1x64xf32, #tpu.memory_space<vmem>>, %arg6: memref<64x32xbf16, #tpu.memory_space<vmem>>, %arg7: memref<1x32xf32, #tpu.memory_space<vmem>>, %arg8: memref<256x32xf32, #tpu.memory_space<vmem>>) attributes {dimension_semantics = [#tpu.dimension_semantics<parallel>], iteration_bounds = array<i64: 1>, scalar_prefetch = 0 : i64, scratch_operands = 0 : i64, tpu.core_type = #tpu.core_type<tc>, window_params = [{transform_indices = @transform_0, window_bounds = array<i64: 256, 32>}, {transform_indices = @transform_1, window_bounds = array<i64: 256, 16>}, {pipeline_mode = #tpu.pipeline_mode<synchronous>, transform_indices = @transform_2, window_bounds = array<i64: 32, 64>}, {pipeline_mode = #tpu.pipeline_mode<synchronous>, transform_indices = @transform_3, window_bounds = array<i64: 16, 64>}, {pipeline_mode = #tpu.pipeline_mode<synchronous>, transform_indices = @transform_4, window_bounds = array<i64: 1, 64>}, {pipeline_mode = #tpu.pipeline_mode<synchronous>, transform_indices = @transform_5, window_bounds = array<i64: 64, 32>}, {pipeline_mode = #tpu.pipeline_mode<synchronous>, transform_indices = @transform_6, window_bounds = array<i64: 1, 32>}, {transform_indices = @transform_7, window_bounds = array<i64: 256, 32>}]} {
    %c0 = arith.constant 0 : index
    %c0_0 = arith.constant 0 : index
    %0 = vector.load %arg1[%c0, %c0_0] : memref<256x32xf32, #tpu.memory_space<vmem>>, vector<256x32xf32>
    %1 = arith.truncf %0 : vector<256x32xf32> to vector<256x32xbf16>
    %c0_1 = arith.constant 0 : index
    %c0_2 = arith.constant 0 : index
    %2 = vector.load %arg3[%c0_1, %c0_2] : memref<32x64xbf16, #tpu.memory_space<vmem>>, vector<32x64xbf16>
    %cst = arith.constant dense<0.000000e+00> : vector<256x64xf32>
    %3 = tpu.matmul %1, %2, %cst {dimension_numbers = #tpu.dot_dimension_numbers<[1], [0], [0], [1], [0, 0, 1, 1], [], []>} : vector<256x32xbf16>, vector<32x64xbf16>, vector<256x64xf32> -> vector<256x64xf32>
    %c0_3 = arith.constant 0 : index
    %c0_4 = arith.constant 0 : index
    %4 = vector.load %arg2[%c0_3, %c0_4] : memref<256x16xf32, #tpu.memory_space<vmem>>, vector<256x16xf32>
    %5 = arith.truncf %4 : vector<256x16xf32> to vector<256x16xbf16>
    %c0_5 = arith.constant 0 : index
    %c0_6 = arith.constant 0 : index
    %6 = vector.load %arg4[%c0_5, %c0_6] : memref<16x64xbf16, #tpu.memory_space<vmem>>, vector<16x64xbf16>
    %cst_7 = arith.constant dense<0.000000e+00> : vector<256x64xf32>
    %7 = tpu.matmul %5, %6, %cst_7 {dimension_numbers = #tpu.dot_dimension_numbers<[1], [0], [0], [1], [0, 0, 1, 1], [], []>} : vector<256x16xbf16>, vector<16x64xbf16>, vector<256x64xf32> -> vector<256x64xf32>
    %8 = arith.addf %3, %7 : vector<256x64xf32>
    %c0_8 = arith.constant 0 : index
    %c0_9 = arith.constant 0 : index
    %9 = vector.load %arg5[%c0_8, %c0_9] : memref<1x64xf32, #tpu.memory_space<vmem>>, vector<1x64xf32>
    %10 = vector.broadcast %9 : vector<1x64xf32> to vector<256x64xf32>
    %11 = arith.addf %8, %10 : vector<256x64xf32>
    %cst_10 = arith.constant 0.000000e+00 : f32
    %12 = vector.broadcast %cst_10 : f32 to vector<256x64xf32>
    %13 = arith.maximumf %11, %12 : vector<256x64xf32>
    %14 = arith.truncf %13 : vector<256x64xf32> to vector<256x64xbf16>
    %c0_11 = arith.constant 0 : index
    %c0_12 = arith.constant 0 : index
    %15 = vector.load %arg6[%c0_11, %c0_12] : memref<64x32xbf16, #tpu.memory_space<vmem>>, vector<64x32xbf16>
    %cst_13 = arith.constant dense<0.000000e+00> : vector<256x32xf32>
    %16 = tpu.matmul %14, %15, %cst_13 {dimension_numbers = #tpu.dot_dimension_numbers<[1], [0], [0], [1], [0, 0, 1, 1], [], []>} : vector<256x64xbf16>, vector<64x32xbf16>, vector<256x32xf32> -> vector<256x32xf32>
    %c0_14 = arith.constant 0 : index
    %c0_15 = arith.constant 0 : index
    %17 = vector.load %arg7[%c0_14, %c0_15] : memref<1x32xf32, #tpu.memory_space<vmem>>, vector<1x32xf32>
    %18 = vector.broadcast %17 : vector<1x32xf32> to vector<256x32xf32>
    %19 = arith.addf %16, %18 : vector<256x32xf32>
    %c0_16 = arith.constant 0 : index
    %c0_17 = arith.constant 0 : index
    %20 = vector.load %arg8[%c0_16, %c0_17] : memref<256x32xf32, #tpu.memory_space<vmem>>, vector<256x32xf32>
    tpu.vector_store %arg8[%c0_16, %c0_17], %19 {strides = array<i32>} : memref<256x32xf32, #tpu.memory_space<vmem>>, vector<256x32xf32>,
    return
  }
  func.func @transform_0(%arg0: i32) -> (i32, i32) {
    %c0_i32 = arith.constant 0 : i32
    %c0_i32_0 = arith.constant 0 : i32
    return %arg0, %c0_i32 : i32, i32
  }
  func.func @transform_1(%arg0: i32) -> (i32, i32) {
    %c0_i32 = arith.constant 0 : i32
    %c0_i32_0 = arith.constant 0 : i32
    return %arg0, %c0_i32 : i32, i32
  }
  func.func @transform_2(%arg0: i32) -> (i32, i32) {
    %c0_i32 = arith.constant 0 : i32
    %c0_i32_0 = arith.constant 0 : i32
    %c0_i32_1 = arith.constant 0 : i32
    return %c0_i32, %c0_i32_0 : i32, i32
  }
  func.func @transform_3(%arg0: i32) -> (i32, i32) {
    %c0_i32 = arith.constant 0 : i32
    %c0_i32_0 = arith.constant 0 : i32
    %c0_i32_1 = arith.constant 0 : i32
    return %c0_i32, %c0_i32_0 : i32, i32
  }
  func.func @transform_4(%arg0: i32) -> (i32, i32) {
    %c0_i32 = arith.constant 0 : i32
    %c0_i32_0 = arith.constant 0 : i32
    %c0_i32_1 = arith.constant 0 : i32
    return %c0_i32, %c0_i32_0 : i32, i32
  }
  func.func @transform_5(%arg0: i32) -> (i32, i32) {
    %c0_i32 = arith.constant 0 : i32
    %c0_i32_0 = arith.constant 0 : i32
    %c0_i32_1 = arith.constant 0 : i32
    return %c0_i32, %c0_i32_0 : i32, i32
  }
  func.func @transform_6(%arg0: i32) -> (i32, i32) {
    %c0_i32 = arith.constant 0 : i32
    %c0_i32_0 = arith.constant 0 : i32
    %c0_i32_1 = arith.constant 0 : i32
    return %c0_i32, %c0_i32_0 : i32, i32
  }
  func.func @transform_7(%arg0: i32) -> (i32, i32) {
    %c0_i32 = arith.constant 0 : i32
    %c0_i32_0 = arith.constant 0 : i32
    return %arg0, %c0_i32 : i32, i32
  }
}

</mosaic_0001>

<bundles_post_ra>
// kernel: _forward_with_action.1
= control target key start
LH: loop header
LB: loop body
LE: loop exit
PB: predicated region body
PF: predicated region fallthrough
CT: control target
= control target key end

     0   :  { %vm135_vm0 = vcmask 130048   ;;  %vm357_vm1 = vcmask 261120   ;;  %vm693_vm2 = vcmask 523264   ;;  %s1753_s3 = inlined_call_operand.vmem [shape: bf16[16,64], index: 3, kind: input, shape index: {}]   ;;  %s1754_s1 = inlined_call_operand.vmem [shape: f32[256,16], index: 1, kind: input, shape index: {}]   ;;  %s1755_s2 = inlined_call_operand.vmem [shape: bf16[32,64], index: 2, kind: input, shape index: {}]   ;;  %s1756_s0 = inlined_call_operand.vmem [shape: f32[256,32], index: 0, kind: input, shape index: {}]   ;;  %s1757_s5 = inlined_call_operand.vmem [shape: bf16[64,32], index: 5, kind: input, shape index: {}]   ;;  %s1758_s4 = inlined_call_operand.vmem [shape: f32[1,64], index: 4, kind: input, shape index: {}]   ;;  %s1759_s6 = inlined_call_operand.vmem [shape: f32[1,32], index: 6, kind: input, shape index: {}]   ;;  %s1760_s7 = inlined_call_operand.vmem [shape: f32[256,32], index: 7, kind: output, shape index: {}]  }
   0x1   :  { %v1195_v0 = vld [vmem:[%s1753_s3] sm:$0xff]   ;;  %v80_v2 = vld [vmem:[%s1754_s1 + $0x8] sm:$0xff]  ;;  %v81_v3 = vld [vmem:[%s1754_s1 + $0x10] sm:$0xff] }
   0x2   :  { %v79_v1 = vld [vmem:[%s1754_s1] sm:$0xff]  ;;  %1051 = vmatprep.subr.bf16.mxu0 %v1195_v0  ;;  %v82_v5 = vld [vmem:[%s1754_s1 + $0x18] sm:$0xff]  ;;  %1161 = vmatprep.subr.bf16.mxu1 %v1195_v0  ;;  %v84_v9 = vld [vmem:[%s1754_s1 + $0x28] sm:$0xff] }
   0x3   :  { %v111_v4 = vpack.c.bf16 %v80_v2, %v79_v1  ;;  %1052 = vmatpush3.bf16.msra.mxu0 %v1195_v0  ;;  %v112_v6 = vpack.c.bf16 %v82_v5, %v81_v3  ;;  %v1196_v7 = vld [vmem:[%s1755_s2] sm:$0xff]   ;;  %1162 = vmatpush3.bf16.msra.mxu1 %v1195_v0  ;;  %v1197_v11 = vld [vmem:[%s1755_s2 + $0x8] sm:$0xff]   ;;  %v85_v12 = vld [vmem:[%s1754_s1 + $0x30] sm:$0xff] }
   0x4   :  { %v83_v8 = vld [vmem:[%s1754_s1 + $0x20] sm:$0xff]  ;;  %1085 = vmatprep.subr.bf16.mxu0 %v1196_v7  ;;  %v86_v13 = vld [vmem:[%s1754_s1 + $0x38] sm:$0xff]  ;;  %v88_v15 = vld [vmem:[%s1754_s1 + $0x48] sm:$0xff] }
   0x5   :  { %1053 = vmatprep.mubr.msk.bf16.mxu0 %vm135_vm0, %v111_v4  ;;  %v113_v10 = vpack.c.bf16 %v84_v9, %v83_v8  ;;  %v87_v14 = vld [vmem:[%s1754_s1 + $0x40] sm:$0xff]  ;;  %v114_v16 = vpack.c.bf16 %v86_v13, %v85_v12  ;;  %v96_v19 = vld [vmem:[%s1754_s1 + $0x88] sm:$0xff]  ;;  %v97_v20 = vld [vmem:[%s1754_s1 + $0x90] sm:$0xff] }
   0x6   :  { %1054 = vmatmul.mubr.msk.bf16.vlgmr.msra.gmra.mrb[0].mxu0 %vm135_vm0, %v112_v6  ;;  %v115_v17 = vpack.c.bf16 %v88_v15, %v87_v14  ;;  %v95_v18 = vld [vmem:[%s1754_s1 + $0x80] sm:$0xff]  ;;  %v98_v21 = vld [vmem:[%s1754_s1 + $0x98] sm:$0xff]  ;;  %v89_v22 = vld [vmem:[%s1754_s1 + $0x50] sm:$0xff] }
   0x7   :  { %1086 = vmatpush3.bf16.msra.mxu0 %v1196_v7  ;;  %1057 = vmatprep.mubr.msk.bf16.mxu0 %vm135_vm0, %v113_v10  ;;  %v90_v23 = vld [vmem:[%s1754_s1 + $0x58] sm:$0xff]  ;;  %v91_v24 = vld [vmem:[%s1754_s1 + $0x60] sm:$0xff]  ;;  %v119_v25 = vpack.c.bf16 %v96_v19, %v95_v18  ;;  %v120_v26 = vpack.c.bf16 %v98_v21, %v97_v20  ;;  %v92_v27 = vld [vmem:[%s1754_s1 + $0x68] sm:$0xff] }
   0x8   :  { %1087 = vmatprep.subr.bf16.mxu0 %v1197_v11  ;;  %v99_v28 = vld [vmem:[%s1754_s1 + $0xa0] sm:$0xff]  ;;  %v100_v29 = vld [vmem:[%s1754_s1 + $0xa8] sm:$0xff]  ;;  %v116_v31 = vpack.c.bf16 %v90_v23, %v89_v22  ;;  %v117_v32 = vpack.c.bf16 %v92_v27, %v91_v24  ;;  %v101_v33 = vld [vmem:[%s1754_s1 + $0xb0] sm:$0xff] }
   0x9   :  { %1069 = vmatprep.mubr.msk.bf16.mxu1 %vm135_vm0, %v119_v25  ;;  %v121_v30 = vpack.c.bf16 %v100_v29, %v99_v28  ;;  %v102_v34 = vld [vmem:[%s1754_s1 + $0xb8] sm:$0xff]  ;;  %v103_v35 = vld [vmem:[%s1754_s1 + $0xc0] sm:$0xff]  ;;  %v104_v36 = vld [vmem:[%s1754_s1 + $0xc8] sm:$0xff] }
   0xa   :  { %1070 = vmatmul.mubr.msk.bf16.vlgmr.msra.gmra.mrb[0].mxu1 %vm135_vm0, %v120_v26  ;;  %v122_v37 = vpack.c.bf16 %v102_v34, %v101_v33  ;;  %v93_v38 = vld [vmem:[%s1754_s1 + $0x70] sm:$0xff]  ;;  %v94_v39 = vld [vmem:[%s1754_s1 + $0x78] sm:$0xff]  ;;  %v27_v40 = vld [vmem:[%s1756_s0] sm:$0xff]  ;;  %v123_v41 = vpack.c.bf16 %v104_v36, %v103_v35 }
   0xb   :  { %1088 = vmatpush3.bf16.msra.mxu0 %v1197_v11  ;;  %1073 = vmatprep.mubr.msk.bf16.mxu1 %vm135_vm0, %v121_v30  ;;  %v28_v42 = vld [vmem:[%s1756_s0 + $0x8] sm:$0xff]  ;;  %v105_v43 = vld [vmem:[%s1754_s1 + $0xd0] sm:$0xff]  ;;  %v1198_v44 = vld [vmem:[%s1757_s5] sm:$0xff]   ;;  %v118_v45 = vpack.c.bf16 %v94_v39, %v93_v38 }
   0xc   :  { %v1199_v46 = vld [vmem:[%s1757_s5 + $0x8] sm:$0xff]   ;;  %v59_v47 = vpack.c.bf16 %v28_v42, %v27_v40  ;;  %v106_v48 = vld [vmem:[%s1754_s1 + $0xd8] sm:$0xff]  ;;  %1121 = vmatprep.subr.bf16.mxu1 %v1198_v44  ;;  %v107_v49 = vld [vmem:[%s1754_s1 + $0xe0] sm:$0xff] }
   0xd   :  { %v108_v50 = vld [vmem:[%s1754_s1 + $0xe8] sm:$0xff]  ;;  %1122 = vmatpush3.bf16.msra.mxu1 %v1198_v44  ;;  %v1200_v51 = vld [vmem:[%s1757_s5 + $0x10] sm:$0xff]   ;;  %v124_v52 = vpack.c.bf16 %v106_v48, %v105_v43  ;;  %v30_v54 = vld [vmem:[%s1756_s0 + $0x18] sm:$0xff] }
   0xe   :  { %1058 = vmatmul.mubr.msk.bf16.gmra.mrb[4].mxu0 %vm135_vm0, %v114_v16  ;;  %1123 = vmatprep.subr.bf16.mxu1 %v1199_v46  ;;  %v29_v53 = vld [vmem:[%s1756_s0 + $0x10] sm:$0xff]  ;;  %v125_v55 = vpack.c.bf16 %v108_v50, %v107_v49  ;;  %v31_v56 = vld [vmem:[%s1756_s0 + $0x20] sm:$0xff]  ;;  %v32_v57 = vld [vmem:[%s1756_s0 + $0x28] sm:$0xff] }
   0xf   :  { %1061 = vmatprep.mubr.msk.bf16.mxu0 %vm135_vm0, %v115_v17  ;;  %v60_v58 = vpack.c.bf16 %v30_v54, %v29_v53  ;;  %v61_v59 = vpack.c.bf16 %v32_v57, %v31_v56  ;;  %v109_v60 = vld [vmem:[%s1754_s1 + $0xf0] sm:$0xff]  ;;  %v110_v61 = vld [vmem:[%s1754_s1 + $0xf8] sm:$0xff]  ;;  %v35_v1 = vld [vmem:[%s1756_s0 + $0x40] sm:$0xff] }
  0x10   :  { %v126_v62 = vpack.c.bf16 %v110_v61, %v109_v60  ;;  %v33_v63 = vld [vmem:[%s1756_s0 + $0x30] sm:$0xff]  ;;  %v34_v0 = vld [vmem:[%s1756_s0 + $0x38] sm:$0xff]  ;;  %v36_v2 = vld [vmem:[%s1756_s0 + $0x48] sm:$0xff] }
  0x11   :  { %1124 = vmatpush3.bf16.msra.mxu1 %v1199_v46  ;;  %v62_v3 = vpack.c.bf16 %v34_v0, %v33_v63  ;;  %v63_v4 = vpack.c.bf16 %v36_v2, %v35_v1  ;;  %v37_v5 = vld [vmem:[%s1756_s0 + $0x50] sm:$0xff]  ;;  %v38_v6 = vld [vmem:[%s1756_s0 + $0x58] sm:$0xff]  ;;  %v39_v7 = vld [vmem:[%s1756_s0 + $0x60] sm:$0xff] }
  0x12   :  { %1074 = vmatmul.mubr.msk.bf16.gmra.mrb[4].mxu1 %vm135_vm0, %v122_v37  ;;  %1125 = vmatprep.subr.bf16.mxu1 %v1200_v51  ;;  %v40_v8 = vld [vmem:[%s1756_s0 + $0x68] sm:$0xff]  ;;  %v64_v9 = vpack.c.bf16 %v38_v6, %v37_v5  ;;  %v41_v11 = vld [vmem:[%s1756_s0 + $0x70] sm:$0xff]  ;;  %v42_v12 = vld [vmem:[%s1756_s0 + $0x78] sm:$0xff] }
  0x13   :  { %1077 = vmatprep.mubr.msk.bf16.mxu1 %vm135_vm0, %v123_v41  ;;  %v65_v10 = vpack.c.bf16 %v40_v8, %v39_v7  ;;  %v43_v13 = vld [vmem:[%s1756_s0 + $0x80] sm:$0xff]  ;;  %v44_v14 = vld [vmem:[%s1756_s0 + $0x88] sm:$0xff]  ;;  %v66_v15 = vpack.c.bf16 %v42_v12, %v41_v11  ;;  %v45_v17 = vld [vmem:[%s1756_s0 + $0x90] sm:$0xff] }
  0x14   :  { %v67_v16 = vpack.c.bf16 %v44_v14, %v43_v13  ;;  %v46_v18 = vld [vmem:[%s1756_s0 + $0x98] sm:$0xff]  ;;  %v47_v19 = vld [vmem:[%s1756_s0 + $0xa0] sm:$0xff]  ;;  %v48_v20 = vld [vmem:[%s1756_s0 + $0xa8] sm:$0xff] }
  0x15   :  { %1126 = vmatpush3.bf16.msra.mxu1 %v1200_v51  ;;  %v68_v21 = vpack.c.bf16 %v46_v18, %v45_v17  ;;  %v69_v22 = vpack.c.bf16 %v48_v20, %v47_v19  ;;  %v49_v23 = vld [vmem:[%s1756_s0 + $0xb0] sm:$0xff]  ;;  %v50_v24 = vld [vmem:[%s1756_s0 + $0xb8] sm:$0xff]  ;;  %v51_v25 = vld [vmem:[%s1756_s0 + $0xc0] sm:$0xff] }
  0x16   :  { %1062 = vmatmul.mubr.msk.bf16.gmra.mrb[8].mxu0 %vm135_vm0, %v116_v31  ;;  %v52_v26 = vld [vmem:[%s1756_s0 + $0xc8] sm:$0xff]  ;;  %v70_v27 = vpack.c.bf16 %v50_v24, %v49_v23  ;;  %v53_v29 = vld [vmem:[%s1756_s0 + $0xd0] sm:$0xff]  ;;  %v54_v30 = vld [vmem:[%s1756_s0 + $0xd8] sm:$0xff] }
  0x17   :  { %1065 = vmatprep.mubr.msk.bf16.mxu0 %vm135_vm0, %v117_v32  ;;  %v71_v28 = vpack.c.bf16 %v52_v26, %v51_v25  ;;  %v55_v31 = vld [vmem:[%s1756_s0 + $0xe0] sm:$0xff]  ;;  %v56_v32 = vld [vmem:[%s1756_s0 + $0xe8] sm:$0xff]  ;;  %v72_v33 = vpack.c.bf16 %v54_v30, %v53_v29  ;;  %v57_v35 = vld [vmem:[%s1756_s0 + $0xf0] sm:$0xff] }
  0x18   :  { %v73_v34 = vpack.c.bf16 %v56_v32, %v55_v31  ;;  %v58_v36 = vld [vmem:[%s1756_s0 + $0xf8] sm:$0xff]  ;;  %v1510_v49 = vld [vmem:[%s1758_s4] ss:$0 sm:$0xff] }
  0x19   :  { %v74_v37 = vpack.c.bf16 %v58_v36, %v57_v35  ;;  %v1201_v38 = vld [vmem:[%s1757_s5 + $0x18] sm:$0xff]  }
  0x1a   :  { %1078 = vmatmul.mubr.msk.bf16.gmra.mrb[8].mxu1 %vm135_vm0, %v124_v52  ;;  %1127 = vmatprep.subr.bf16.mxu1 %v1201_v38 }
  0x1b   :  { %1081 = vmatprep.mubr.msk.bf16.mxu1 %vm135_vm0, %v125_v55  ;;  %1128 = vmatpush3.bf16.msra.mxu1 %v1201_v38 }
  0x1e   :  { %1066 = vmatmul.mubr.msk.bf16.gmra.mrb[12].mxu0 %vm135_vm0, %v118_v45 }
  0x1f   :  { %1089 = vmatprep.mubr.msk.bf16.mxu0 %vm357_vm1, %v59_v47 }
  0x22   :  { %1082 = vmatmul.mubr.msk.bf16.gmra.mrb[12].mxu1 %vm135_vm0, %v126_v62 }
  0x26   :  { %1090 = vmatmul.mubr.msk.bf16.vlgmr.msra.gmra.mrb[0].mxu0 %vm357_vm1, %v60_v58 }
  0x27   :  { %1093 = vmatprep.mubr.msk.bf16.mxu0 %vm357_vm1, %v61_v59 }
  0x2e   :  { %1094 = vmatmul.mubr.msk.bf16.gmra.mrb[4].mxu0 %vm357_vm1, %v62_v3 }
  0x2f   :  { %1097 = vmatprep.mubr.msk.bf16.mxu0 %vm357_vm1, %v63_v4 }
  0x36   :  { %1098 = vmatmul.mubr.msk.bf16.gmra.mrb[8].mxu0 %vm357_vm1, %v64_v9 }
  0x37   :  { %1101 = vmatprep.mubr.msk.bf16.mxu0 %vm357_vm1, %v65_v10 }
  0x3e   :  { %1102 = vmatmul.mubr.msk.bf16.gmra.mrb[12].mxu0 %vm357_vm1, %v66_v15 }
  0x3f   :  { %1105 = vmatprep.mubr.msk.bf16.mxu0 %vm357_vm1, %v67_v16 }
  0x46   :  { %1106 = vmatmul.mubr.msk.bf16.gmra.mrb[16].mxu0 %vm357_vm1, %v68_v21 }
  0x47   :  { %1109 = vmatprep.mubr.msk.bf16.mxu0 %vm357_vm1, %v69_v22 }
  0x4e   :  { %1110 = vmatmul.mubr.msk.bf16.gmra.mrb[20].mxu0 %vm357_vm1, %v70_v27 }
  0x4f   :  { %1113 = vmatprep.mubr.msk.bf16.mxu0 %vm357_vm1, %v71_v28 }
  0x56   :  { %1114 = vmatmul.mubr.msk.bf16.gmra.mrb[24].mxu0 %vm357_vm1, %v72_v33 }
  0x57   :  { %1117 = vmatprep.mubr.msk.bf16.mxu0 %vm357_vm1, %v73_v34 }
  0x5e   :  { %1118 = vmatmul.mubr.msk.bf16.gmra.mrb[28].mxu0 %vm357_vm1, %v74_v37 }
  0xdd   :  { %v1487_v39 = vpop.f32.mrb[0].mxu1 }
  0xde   :  { %v1489_v40 = vpop.f32.mrb[1].mxu1 }
  0xdf   :  { %v1491_v41 = vpop.f32.mrb[2].mxu1 }
  0xe0   :  { %v1493_v42 = vpop.f32.mrb[3].mxu1 }
  0xe5   :  { %v1495_v43 = vpop.f32.mrb[4].mxu1 }
  0xe6   :  { %v1497_v44 = vpop.f32.mrb[5].mxu1 }
  0xe7   :  { %v1499_v45 = vpop.f32.mrb[6].mxu1 }
  0xe8   :  { %v1501_v46 = vpop.f32.mrb[7].mxu1 }
  0xed   :  { %v1503_v47 = vpop.f32.mrb[8].mxu1 }
  0xee   :  { %v1505_v48 = vpop.f32.mrb[9].mxu1 }
  0xef   :  { %v1512_v50 = vpop.f32.mrb[10].mxu1 }
  0xf0   :  { %v1514_v51 = vpop.f32.mrb[11].mxu1 }
  0xf5   :  { %v1520_v60 = vpop.f32.mrb[12].mxu1 }
  0xf6   :  { %v1522_v63 = vpop.f32.mrb[13].mxu1 }
  0xf7   :  { %v1524_v2 = vpop.f32.mrb[14].mxu1 }
  0xf8   :  { %v1526_v4 = vpop.f32.mrb[15].mxu1 }
  0xf9   :  { %v1091_v52 = vpop.f32.mrb[0].mxu0 }
  0xfa   :  { %v576_v53 = vadd.f32 %v1091_v52, %v1510_v49  ;;  %v440_v54 = vpop.f32.mrb[1].mxu0 }
  0xfb   :  { %v574_v55 = vadd.f32 %v1510_v49, %v440_v54  ;;  %v1092_v56 = vpop.f32.mrb[2].mxu0 }
  0xfc   :  { %v577_v57 = vadd.f32 %v1092_v56, %v1510_v49  ;;  %v443_v58 = vpop.f32.mrb[3].mxu0  ;;  %v608_v61 = vmax.f32 %v576_v53, 0.0 }
  0xfd   :  { %v575_v59 = vadd.f32 %v1510_v49, %v443_v58  ;;  %v606_v0 = vmax.f32 %v574_v55, 0.0 }
  0xfe   :  { %v609_v62 = vmax.f32 %v577_v57, 0.0 }
  0xff   :  { %v607_v1 = vmax.f32 %v575_v59, 0.0 }
 0x100   :  { %v639_v3 = vpack.c.bf16 %v609_v62, %v608_v61 }
 0x101   :  { %v638_v5 = vpack.c.bf16 %v607_v1, %v606_v0  ;;  %v1095_v6 = vpop.f32.mrb[4].mxu0 }
 0x102   :  { %v580_v7 = vadd.f32 %v1095_v6, %v1510_v49  ;;  %v456_v8 = vpop.f32.mrb[5].mxu0 }
 0x103   :  { %v578_v9 = vadd.f32 %v1510_v49, %v456_v8  ;;  %v1096_v10 = vpop.f32.mrb[6].mxu0  ;;  %1129 = vmatprep.mubr.msk.bf16.mxu1 %vm693_vm2, %v638_v5 }
 0x104   :  { %v581_v11 = vadd.f32 %v1096_v10, %v1510_v49  ;;  %v459_v12 = vpop.f32.mrb[7].mxu0  ;;  %1130 = vmatmul.mubr.msk.bf16.vlgmr.msra.gmra.mrb[16].mxu1 %vm693_vm2, %v639_v3  ;;  %v612_v14 = vmax.f32 %v580_v7, 0.0 }
 0x105   :  { %v579_v13 = vadd.f32 %v1510_v49, %v459_v12  ;;  %v610_v16 = vmax.f32 %v578_v9, 0.0 }
 0x106   :  { %v613_v15 = vmax.f32 %v581_v11, 0.0 }
 0x107   :  { %v611_v17 = vmax.f32 %v579_v13, 0.0 }
 0x108   :  { %v641_v18 = vpack.c.bf16 %v613_v15, %v612_v14 }
 0x109   :  { %v640_v19 = vpack.c.bf16 %v611_v17, %v610_v16  ;;  %v1099_v20 = vpop.f32.mrb[8].mxu0 }
 0x10a   :  { %v584_v21 = vadd.f32 %v1099_v20, %v1510_v49  ;;  %v472_v22 = vpop.f32.mrb[9].mxu0 }
 0x10b   :  { %v582_v23 = vadd.f32 %v1510_v49, %v472_v22  ;;  %v1100_v24 = vpop.f32.mrb[10].mxu0  ;;  %1133 = vmatprep.mubr.msk.bf16.mxu1 %vm693_vm2, %v640_v19 }
 0x10c   :  { %v585_v25 = vadd.f32 %v1100_v24, %v1510_v49  ;;  %v475_v26 = vpop.f32.mrb[11].mxu0  ;;  %1134 = vmatmul.mubr.msk.bf16.gmra.mrb[20].mxu1 %vm693_vm2, %v641_v18  ;;  %v616_v28 = vmax.f32 %v584_v21, 0.0 }
 0x10d   :  { %v583_v27 = vadd.f32 %v1510_v49, %v475_v26  ;;  %v614_v30 = vmax.f32 %v582_v23, 0.0 }
 0x10e   :  { %v617_v29 = vmax.f32 %v585_v25, 0.0 }
 0x10f   :  { %v615_v31 = vmax.f32 %v583_v27, 0.0 }
 0x110   :  { %v643_v32 = vpack.c.bf16 %v617_v29, %v616_v28 }
 0x111   :  { %v642_v33 = vpack.c.bf16 %v615_v31, %v614_v30  ;;  %v1103_v34 = vpop.f32.mrb[12].mxu0 }
 0x112   :  { %v588_v35 = vadd.f32 %v1103_v34, %v1510_v49  ;;  %v488_v36 = vpop.f32.mrb[13].mxu0 }
 0x113   :  { %v586_v37 = vadd.f32 %v1510_v49, %v488_v36  ;;  %v1104_v38 = vpop.f32.mrb[14].mxu0  ;;  %1137 = vmatprep.mubr.msk.bf16.mxu1 %vm693_vm2, %v642_v33 }
 0x114   :  { %v589_v52 = vadd.f32 %v1104_v38, %v1510_v49  ;;  %v491_v53 = vpop.f32.mrb[15].mxu0  ;;  %1138 = vmatmul.mubr.msk.bf16.gmra.mrb[24].mxu1 %vm693_vm2, %v643_v32  ;;  %v620_v55 = vmax.f32 %v588_v35, 0.0 }
 0x115   :  { %v587_v54 = vadd.f32 %v1510_v49, %v491_v53  ;;  %v618_v57 = vmax.f32 %v586_v37, 0.0 }
 0x116   :  { %v621_v56 = vmax.f32 %v589_v52, 0.0 }
 0x117   :  { %v619_v58 = vmax.f32 %v587_v54, 0.0 }
 0x118   :  { %v645_v59 = vpack.c.bf16 %v621_v56, %v620_v55 }
 0x119   :  { %v644_v61 = vpack.c.bf16 %v619_v58, %v618_v57  ;;  %v1107_v62 = vpop.f32.mrb[16].mxu0 }
 0x11a   :  { %v513_v0 = vadd.f32 %v1107_v62, %v1487_v39  ;;  %v504_v1 = vpop.f32.mrb[17].mxu0 }
 0x11b   :  { %v505_v3 = vadd.f32 %v504_v1, %v1489_v40  ;;  %v1108_v5 = vpop.f32.mrb[18].mxu0  ;;  %1141 = vmatprep.mubr.msk.bf16.mxu1 %vm693_vm2, %v644_v61 }
 0x11c   :  { %v592_v6 = vadd.f32 %v1510_v49, %v513_v0  ;;  %v516_v7 = vadd.f32 %v1108_v5, %v1491_v41  ;;  %v507_v8 = vpop.f32.mrb[19].mxu0  ;;  %1142 = vmatmul.mubr.msk.bf16.gmra.mrb[28].mxu1 %vm693_vm2, %v645_v59 }
 0x11d   :  { %v590_v9 = vadd.f32 %v1510_v49, %v505_v3  ;;  %v508_v10 = vadd.f32 %v507_v8, %v1493_v42 }
 0x11e   :  { %v593_v11 = vadd.f32 %v1510_v49, %v516_v7  ;;  %v624_v12 = vmax.f32 %v592_v6, 0.0 }
 0x11f   :  { %v591_v39 = vadd.f32 %v1510_v49, %v508_v10  ;;  %v622_v13 = vmax.f32 %v590_v9, 0.0 }
 0x120   :  { %v625_v40 = vmax.f32 %v593_v11, 0.0 }
 0x121   :  { %v623_v14 = vmax.f32 %v591_v39, 0.0  ;;  %v1111_v15 = vpop.f32.mrb[20].mxu0 }
 0x122   :  { %v647_v16 = vpack.c.bf16 %v625_v40, %v624_v12  ;;  %v529_v17 = vadd.f32 %v1111_v15, %v1495_v43  ;;  %v520_v41 = vpop.f32.mrb[21].mxu0 }
 0x123   :  { %v646_v18 = vpack.c.bf16 %v623_v14, %v622_v13  ;;  %v521_v19 = vadd.f32 %v520_v41, %v1497_v44  ;;  %v1112_v20 = vpop.f32.mrb[22].mxu0 }
 0x124   :  { %v596_v21 = vadd.f32 %v1510_v49, %v529_v17  ;;  %v532_v42 = vadd.f32 %v1112_v20, %v1499_v45  ;;  %v523_v22 = vpop.f32.mrb[23].mxu0 }
 0x125   :  { %v594_v23 = vadd.f32 %v1510_v49, %v521_v19  ;;  %v524_v24 = vadd.f32 %v523_v22, %v1501_v46  ;;  %1145 = vmatprep.mubr.msk.bf16.mxu1 %vm693_vm2, %v646_v18 }
 0x126   :  { %v597_v25 = vadd.f32 %v1510_v49, %v532_v42  ;;  %1146 = vmatmul.mubr.msk.bf16.gmra.mrb[32].mxu1 %vm693_vm2, %v647_v16  ;;  %v628_v26 = vmax.f32 %v596_v21, 0.0 }
 0x127   :  { %v595_v43 = vadd.f32 %v1510_v49, %v524_v24  ;;  %v626_v27 = vmax.f32 %v594_v23, 0.0 }
 0x128   :  { %v629_v44 = vmax.f32 %v597_v25, 0.0 }
 0x129   :  { %v627_v28 = vmax.f32 %v595_v43, 0.0  ;;  %v1115_v29 = vpop.f32.mrb[24].mxu0 }
 0x12a   :  { %v649_v30 = vpack.c.bf16 %v629_v44, %v628_v26  ;;  %v545_v45 = vadd.f32 %v1115_v29, %v1503_v47  ;;  %v536_v31 = vpop.f32.mrb[25].mxu0 }
 0x12b   :  { %v648_v32 = vpack.c.bf16 %v627_v28, %v626_v27  ;;  %v537_v46 = vadd.f32 %v536_v31, %v1505_v48  ;;  %v1116_v33 = vpop.f32.mrb[26].mxu0 }
 0x12c   :  { %v600_v34 = vadd.f32 %v1510_v49, %v545_v45  ;;  %v548_v35 = vadd.f32 %v1116_v33, %v1512_v50  ;;  %v539_v36 = vpop.f32.mrb[27].mxu0 }
 0x12d   :  { %v598_v37 = vadd.f32 %v1510_v49, %v537_v46  ;;  %v540_v38 = vadd.f32 %v539_v36, %v1514_v51  ;;  %1149 = vmatprep.mubr.msk.bf16.mxu1 %vm693_vm2, %v648_v32 }
 0x12e   :  { %v601_v52 = vadd.f32 %v1510_v49, %v548_v35  ;;  %1150 = vmatmul.mubr.msk.bf16.gmra.mrb[36].mxu1 %vm693_vm2, %v649_v30  ;;  %v632_v53 = vmax.f32 %v600_v34, 0.0 }
 0x12f   :  { %v599_v47 = vadd.f32 %v1510_v49, %v540_v38  ;;  %v630_v54 = vmax.f32 %v598_v37, 0.0 }
 0x130   :  { %v633_v48 = vmax.f32 %v601_v52, 0.0 }
 0x131   :  { %v631_v55 = vmax.f32 %v599_v47, 0.0  ;;  %v1119_v56 = vpop.f32.mrb[28].mxu0 }
 0x132   :  { %v651_v57 = vpack.c.bf16 %v633_v48, %v632_v53  ;;  %v561_v50 = vadd.f32 %v1119_v56, %v1520_v60  ;;  %v552_v58 = vpop.f32.mrb[29].mxu0 }
 0x133   :  { %v650_v59 = vpack.c.bf16 %v631_v55, %v630_v54  ;;  %v553_v51 = vadd.f32 %v552_v58, %v1522_v63  ;;  %v1120_v61 = vpop.f32.mrb[30].mxu0 }
 0x134   :  { %v604_v62 = vadd.f32 %v1510_v49, %v561_v50  ;;  %v564_v0 = vadd.f32 %v1120_v61, %v1524_v2  ;;  %v555_v1 = vpop.f32.mrb[31].mxu0  ;;  %v1591_v2 = vld [vmem:[%s1759_s6] ss:$0 sm:$0xff] }
 0x135   :  { %v602_v3 = vadd.f32 %v1510_v49, %v553_v51  ;;  %v556_v5 = vadd.f32 %v555_v1, %v1526_v4  ;;  %1153 = vmatprep.mubr.msk.bf16.mxu1 %vm693_vm2, %v650_v59 }
 0x136   :  { %v605_v6 = vadd.f32 %v1510_v49, %v564_v0  ;;  %1154 = vmatmul.mubr.msk.bf16.gmra.mrb[40].mxu1 %vm693_vm2, %v651_v57  ;;  %v636_v7 = vmax.f32 %v604_v62, 0.0 }
 0x137   :  { %v603_v60 = vadd.f32 %v1510_v49, %v556_v5  ;;  %v634_v8 = vmax.f32 %v602_v3, 0.0 }
 0x138   :  { %v637_v63 = vmax.f32 %v605_v6, 0.0 }
 0x139   :  { %v635_v9 = vmax.f32 %v603_v60, 0.0 }
 0x13a   :  { %v653_v10 = vpack.c.bf16 %v637_v63, %v636_v7 }
 0x13b   :  { %v652_v11 = vpack.c.bf16 %v635_v9, %v634_v8 }
 0x13d   :  { %1157 = vmatprep.mubr.msk.bf16.mxu1 %vm693_vm2, %v652_v11 }
 0x13e   :  { %1158 = vmatmul.mubr.msk.bf16.gmra.mrb[44].mxu1 %vm693_vm2, %v653_v10 }
 0x1d7   :  { %v1131_v4 = vpop.f32.mrb[16].mxu1 }
 0x1d8   :  { %v785_v39 = vadd.f32 %v1131_v4, %v1591_v2  ;;  %v776_v12 = vpop.f32.mrb[17].mxu1 }
 0x1d9   :  { %v777_v49 = vadd.f32 %v1591_v2, %v776_v12  ;;  %v1132_v40 = vpop.f32.mrb[18].mxu1 }
 0x1da   :  { %905 = vst.msk [vmem:[%s1760_s7 + $0x10] sm:$0xff] %vm357_vm1, %v785_v39  ;;  %v788_v13 = vadd.f32 %v1132_v40, %v1591_v2  ;;  %v779_v14 = vpop.f32.mrb[19].mxu1 }
 0x1db   :  { %903 = vst.msk [vmem:[%s1760_s7] sm:$0xff] %vm357_vm1, %v777_v49  ;;  %v780_v15 = vadd.f32 %v1591_v2, %v779_v14 }
 0x1dc   :  { %906 = vst.msk [vmem:[%s1760_s7 + $0x18] sm:$0xff] %vm357_vm1, %v788_v13 }
 0x1dd   :  { %904 = vst.msk [vmem:[%s1760_s7 + $0x8] sm:$0xff] %vm357_vm1, %v780_v15 }
 0x1df   :  { %v1135_v16 = vpop.f32.mrb[20].mxu1 }
 0x1e0   :  { %v801_v17 = vadd.f32 %v1135_v16, %v1591_v2  ;;  %v792_v41 = vpop.f32.mrb[21].mxu1 }
 0x1e1   :  { %v793_v18 = vadd.f32 %v1591_v2, %v792_v41  ;;  %v1136_v19 = vpop.f32.mrb[22].mxu1 }
 0x1e2   :  { %909 = vst.msk [vmem:[%s1760_s7 + $0x30] sm:$0xff] %vm357_vm1, %v801_v17  ;;  %v804_v20 = vadd.f32 %v1136_v19, %v1591_v2  ;;  %v795_v21 = vpop.f32.mrb[23].mxu1 }
 0x1e3   :  { %907 = vst.msk [vmem:[%s1760_s7 + $0x20] sm:$0xff] %vm357_vm1, %v793_v18  ;;  %v796_v42 = vadd.f32 %v1591_v2, %v795_v21 }
 0x1e4   :  { %910 = vst.msk [vmem:[%s1760_s7 + $0x38] sm:$0xff] %vm357_vm1, %v804_v20 }
 0x1e5   :  { %908 = vst.msk [vmem:[%s1760_s7 + $0x28] sm:$0xff] %vm357_vm1, %v796_v42 }
 0x1e7   :  { %v1139_v22 = vpop.f32.mrb[24].mxu1 }
 0x1e8   :  { %v817_v23 = vadd.f32 %v1139_v22, %v1591_v2  ;;  %v808_v24 = vpop.f32.mrb[25].mxu1 }
 0x1e9   :  { %v809_v25 = vadd.f32 %v1591_v2, %v808_v24  ;;  %v1140_v43 = vpop.f32.mrb[26].mxu1 }
 0x1ea   :  { %913 = vst.msk [vmem:[%s1760_s7 + $0x50] sm:$0xff] %vm357_vm1, %v817_v23  ;;  %v820_v26 = vadd.f32 %v1140_v43, %v1591_v2  ;;  %v811_v44 = vpop.f32.mrb[27].mxu1 }
 0x1eb   :  { %911 = vst.msk [vmem:[%s1760_s7 + $0x40] sm:$0xff] %vm357_vm1, %v809_v25  ;;  %v812_v27 = vadd.f32 %v1591_v2, %v811_v44 }
 0x1ec   :  { %914 = vst.msk [vmem:[%s1760_s7 + $0x58] sm:$0xff] %vm357_vm1, %v820_v26 }
 0x1ed   :  { %912 = vst.msk [vmem:[%s1760_s7 + $0x48] sm:$0xff] %vm357_vm1, %v812_v27 }
 0x1ef   :  { %v1143_v28 = vpop.f32.mrb[28].mxu1 }
 0x1f0   :  { %v833_v29 = vadd.f32 %v1143_v28, %v1591_v2  ;;  %v824_v30 = vpop.f32.mrb[29].mxu1 }
 0x1f1   :  { %v825_v45 = vadd.f32 %v1591_v2, %v824_v30  ;;  %v1144_v31 = vpop.f32.mrb[30].mxu1 }
 0x1f2   :  { %917 = vst.msk [vmem:[%s1760_s7 + $0x70] sm:$0xff] %vm357_vm1, %v833_v29  ;;  %v836_v32 = vadd.f32 %v1144_v31, %v1591_v2  ;;  %v827_v46 = vpop.f32.mrb[31].mxu1 }
 0x1f3   :  { %915 = vst.msk [vmem:[%s1760_s7 + $0x60] sm:$0xff] %vm357_vm1, %v825_v45  ;;  %v828_v33 = vadd.f32 %v1591_v2, %v827_v46 }
 0x1f4   :  { %918 = vst.msk [vmem:[%s1760_s7 + $0x78] sm:$0xff] %vm357_vm1, %v836_v32 }
 0x1f5   :  { %916 = vst.msk [vmem:[%s1760_s7 + $0x68] sm:$0xff] %vm357_vm1, %v828_v33 }
 0x1f9   :  { %v1147_v34 = vpop.f32.mrb[32].mxu1 }
 0x1fa   :  { %v849_v35 = vadd.f32 %v1147_v34, %v1591_v2  ;;  %v840_v36 = vpop.f32.mrb[33].mxu1 }
 0x1fb   :  { %v841_v37 = vadd.f32 %v1591_v2, %v840_v36  ;;  %v1148_v38 = vpop.f32.mrb[34].mxu1 }
 0x1fc   :  { %921 = vst.msk [vmem:[%s1760_s7 + $0x90] sm:$0xff] %vm357_vm1, %v849_v35  ;;  %v852_v52 = vadd.f32 %v1148_v38, %v1591_v2  ;;  %v843_v47 = vpop.f32.mrb[35].mxu1 }
 0x1fd   :  { %919 = vst.msk [vmem:[%s1760_s7 + $0x80] sm:$0xff] %vm357_vm1, %v841_v37  ;;  %v844_v53 = vadd.f32 %v1591_v2, %v843_v47 }
 0x1fe   :  { %922 = vst.msk [vmem:[%s1760_s7 + $0x98] sm:$0xff] %vm357_vm1, %v852_v52 }
 0x1ff   :  { %920 = vst.msk [vmem:[%s1760_s7 + $0x88] sm:$0xff] %vm357_vm1, %v844_v53 }
 0x201   :  { %v1151_v48 = vpop.f32.mrb[36].mxu1 }
 0x202   :  { %v865_v54 = vadd.f32 %v1151_v48, %v1591_v2  ;;  %v856_v55 = vpop.f32.mrb[37].mxu1 }
 0x203   :  { %v857_v56 = vadd.f32 %v1591_v2, %v856_v55  ;;  %v1152_v57 = vpop.f32.mrb[38].mxu1 }
 0x204   :  { %925 = vst.msk [vmem:[%s1760_s7 + $0xb0] sm:$0xff] %vm357_vm1, %v865_v54  ;;  %v868_v50 = vadd.f32 %v1152_v57, %v1591_v2  ;;  %v859_v58 = vpop.f32.mrb[39].mxu1 }
 0x205   :  { %923 = vst.msk [vmem:[%s1760_s7 + $0xa0] sm:$0xff] %vm357_vm1, %v857_v56  ;;  %v860_v59 = vadd.f32 %v1591_v2, %v859_v58 }
 0x206   :  { %926 = vst.msk [vmem:[%s1760_s7 + $0xb8] sm:$0xff] %vm357_vm1, %v868_v50 }
 0x207   :  { %924 = vst.msk [vmem:[%s1760_s7 + $0xa8] sm:$0xff] %vm357_vm1, %v860_v59 }
 0x209   :  { %v1155_v51 = vpop.f32.mrb[40].mxu1 }
 0x20a   :  { %v881_v61 = vadd.f32 %v1155_v51, %v1591_v2  ;;  %v872_v62 = vpop.f32.mrb[41].mxu1 }
 0x20b   :  { %v873_v0 = vadd.f32 %v1591_v2, %v872_v62  ;;  %v1156_v1 = vpop.f32.mrb[42].mxu1 }
 0x20c   :  { %929 = vst.msk [vmem:[%s1760_s7 + $0xd0] sm:$0xff] %vm357_vm1, %v881_v61  ;;  %v884_v3 = vadd.f32 %v1156_v1, %v1591_v2  ;;  %v875_v5 = vpop.f32.mrb[43].mxu1 }
 0x20d   :  { %927 = vst.msk [vmem:[%s1760_s7 + $0xc0] sm:$0xff] %vm357_vm1, %v873_v0  ;;  %v876_v6 = vadd.f32 %v1591_v2, %v875_v5 }
 0x20e   :  { %930 = vst.msk [vmem:[%s1760_s7 + $0xd8] sm:$0xff] %vm357_vm1, %v884_v3 }
 0x20f   :  { %928 = vst.msk [vmem:[%s1760_s7 + $0xc8] sm:$0xff] %vm357_vm1, %v876_v6 }
 0x211   :  { %v1159_v60 = vpop.f32.mrb[44].mxu1 }
 0x212   :  { %v897_v7 = vadd.f32 %v1159_v60, %v1591_v2  ;;  %v888_v63 = vpop.f32.mrb[45].mxu1 }
 0x213   :  { %v889_v8 = vadd.f32 %v1591_v2, %v888_v63  ;;  %v1160_v9 = vpop.f32.mrb[46].mxu1 }
 0x214   :  { %933 = vst.msk [vmem:[%s1760_s7 + $0xf0] sm:$0xff] %vm357_vm1, %v897_v7  ;;  %v900_v10 = vadd.f32 %v1160_v9, %v1591_v2  ;;  %v891_v11 = vpop.f32.mrb[47].mxu1 }
 0x215   :  { %931 = vst.msk [vmem:[%s1760_s7 + $0xe0] sm:$0xff] %vm357_vm1, %v889_v8  ;;  %v892_v4 = vadd.f32 %v1591_v2, %v891_v11 }
 0x216   :  { %934 = vst.msk [vmem:[%s1760_s7 + $0xf8] sm:$0xff] %vm357_vm1, %v900_v10 }
 0x217   :  { %932 = vst.msk [vmem:[%s1760_s7 + $0xe8] sm:$0xff] %vm357_vm1, %v892_v4 }

</bundles_post_ra>
